<compile_context>
chip_gen: v7x
topology: tpu7x:2x2x1
jax: 0.10.0
libtpu: 0.0.40
codegen_flags: <defaults>
</compile_context>

<pallas_src>
import functools

import jax
import jax.numpy as jnp
from jax import lax
from jax.experimental import pallas as pl
from jax.experimental.pallas import tpu as pltpu


# ----------------------------------------------------------------------------- kernel
def _ema_kernel(nb, cg, h, w,
                x_ref, pm_ref, eh_ref, ew_ref, mask_ref,
                bmask_ref, w1_ref, w3_ref, vec_ref,
                o_ref):
    hw = h * w
    nc = nb * cg
    x = x_ref[...].astype(jnp.float32)                      # (nc, hw) lane-dense slab

    vecs = vec_ref[...]                                      # (nc, 4): b1 | b3 | gamma | beta
    b1 = vecs[:, 0:1]
    b3 = vecs[:, 1:2]
    gamma = vecs[:, 2:3]
    beta = vecs[:, 3:4]

    # ---- pool_h / pool_w (avg over W | avg over H): ONE matmul, scaling pre-baked ---
    cat = jnp.dot(x, pm_ref[...], preferred_element_type=jnp.float32)   # (nc, h+w)

    # ---- conv1x1 over channels (block-diag weight handles all nb samples at once) ---
    hw1 = jnp.dot(w1_ref[...], cat, preferred_element_type=jnp.float32) + b1
    xh_s = jax.nn.sigmoid(hw1[:, :h])                        # (nc, h)
    xw_s = jax.nn.sigmoid(hw1[:, h:])                        # (nc, w)

    # ---- expand gates back to (nc, hw) with one-hot matmuls (no lane reshapes) ------
    gate = (jnp.dot(xh_s, eh_ref[...], preferred_element_type=jnp.float32) *
            jnp.dot(xw_s, ew_ref[...], preferred_element_type=jnp.float32))  # (nc, hw)
    xg = x * gate

    # ---- GroupNorm(num_groups == num_channels): per-row normalization over hw -------
    mu = jnp.mean(xg, axis=1, keepdims=True)
    var = jnp.mean((xg - mu) ** 2, axis=1, keepdims=True)
    x1 = (xg - mu) * lax.rsqrt(var + 1e-5) * gamma + beta                    # (nc, hw)

    # ---- conv3x3(pad=1): 9 lane-rotated + masked taps, one wide-K MXU matmul --------
    def lane_roll(arr, d):                                   # rolled[j] = arr[(j + d) % hw]
        d = d % hw
        if d == 0:
            return arr
        return jnp.concatenate([arr[:, d:], arr[:, :d]], axis=1)

    taps = []
    for ky in range(3):                                      # static 3x3 taps
        for kx in range(3):
            k = ky * 3 + kx
            d = (ky - 1) * w + (kx - 1)
            sh = lane_roll(x, d)
            if d == 0:                                       # center tap: always valid
                taps.append(sh)
            else:                                            # zero out row/col crossings
                taps.append(sh * mask_ref[k:k + 1, :])
    stacked = jnp.concatenate(taps, axis=0)                                  # (9*nc, hw)
    x2 = jnp.dot(w3_ref[...], stacked, preferred_element_type=jnp.float32) + b3

    # ---- global-avg-pool -> per-sample softmax over channels ------------------------
    s1 = jnp.mean(x1, axis=1, keepdims=True)                 # (nc, 1)
    s2 = jnp.mean(x2, axis=1, keepdims=True)
    e1 = jnp.exp(s1 - jnp.max(s1, keepdims=True))            # global shift: softmax-invariant
    e2 = jnp.exp(s2 - jnp.max(s2, keepdims=True))
    bmask = bmask_ref[...]                                   # block-diag ones: per-sample sum+bcast
    denoms = jnp.dot(bmask, jnp.concatenate([e1, e2], axis=1),
                     preferred_element_type=jnp.float32)     # (nc, 2)
    sm1 = e1 / denoms[:, 0:1]
    sm2 = e2 / denoms[:, 1:2]

    # ---- weights = softmax(agp(x1))·x2 + softmax(agp(x2))·x1, bcast over channels ---
    wts = jnp.dot(bmask, sm1 * x2 + sm2 * x1, preferred_element_type=jnp.float32)
    o_ref[...] = (x * jax.nn.sigmoid(wts)).astype(o_ref.dtype)


# ----------------------------------------------------------------------------- wrapper
def _pick_block_samples(bg, cg, target):
    nb = max(1, min(target, bg))
    while bg % nb:
        nb -= 1
    if bg > 1 and bg // nb < 2:            # keep >= 2 grid blocks (dual-TC v7x)
        nb = max(1, nb // 2)
        while bg % nb:
            nb -= 1
    if (nb * cg) % 8 and nb != bg:         # (8,128) rule: sublane dim mult of 8 or full
        nb = bg
    return nb


@functools.partial(jax.jit, static_argnames=("groups", "block_samples"))
def ema_forward(x, params, groups=1, block_samples=8):
    b, c, h, w = x.shape
    cg = c // groups
    bg = b * groups
    hw = h * w
    nb = _pick_block_samples(bg, cg, block_samples)
    nc = nb * cg
    f32 = jnp.float32

    xf = x.reshape(bg * cg, hw)            # lane-dense: h*w on the 128-lane axis

    # one-hot pooling / expansion matrices (shared constants, DMA'd once)
    lane = jnp.arange(hw)
    rows = lane // w
    cols = lane % w
    eh = (rows[None, :] == jnp.arange(h)[:, None]).astype(f32)      # (h, hw) gate expand
    ew = (cols[None, :] == jnp.arange(w)[:, None]).astype(f32)      # (w, hw)
    pm = jnp.concatenate([eh.T / w, ew.T / h], axis=1)              # (hw, h+w) pooling (pre-scaled)

    # precomputed conv3x3 boundary masks (tap k = ky*3 + kx)
    masks = []
    for ky in range(3):
        for kx in range(3):
            dy, dx = ky - 1, kx - 1
            valid = ((rows + dy >= 0) & (rows + dy < h) &
                     (cols + dx >= 0) & (cols + dx < w))
            masks.append(valid.astype(f32))
    masks = jnp.stack(masks, axis=0)                                # (9, hw)

    # block-diagonal per-sample weights so nb samples share single matmuls
    eye_nb = jnp.eye(nb, dtype=f32)
    w1_big = jnp.kron(eye_nb, params["w1"].astype(f32))             # (nc, nc)
    w3_taps = jnp.transpose(params["w3"].astype(f32), (2, 3, 0, 1)).reshape(9, cg, cg)
    w3_big = jnp.concatenate([jnp.kron(eye_nb, w3_taps[k]) for k in range(9)],
                             axis=1)                                # (nc, 9*nc)
    bmask = jnp.kron(eye_nb, jnp.ones((cg, cg), f32))               # (nc, nc)

    def tile_col(v):
        return jnp.tile(v.astype(f32), nb).reshape(nc, 1)

    chan_vecs = jnp.concatenate(
        [tile_col(params["b1"]), tile_col(params["b3"]),
         tile_col(params["gamma"]), tile_col(params["beta"])], axis=1)      # (nc, 4)

    kernel = functools.partial(_ema_kernel, nb, cg, h, w)
    const2 = lambda i: (0, 0)

    out = pl.pallas_call(
        kernel,
        out_shape=jax.ShapeDtypeStruct((bg * cg, hw), x.dtype),
        grid_spec=pltpu.PrefetchScalarGridSpec(
            num_scalar_prefetch=0,
            grid=(bg // nb,),
            in_specs=[
                pl.BlockSpec((nc, hw), lambda i: (i, 0)),    # x slab: nb samples / step
                pl.BlockSpec((hw, h + w), const2),           # pooling matrix (pre-scaled)
                pl.BlockSpec((h, hw), const2),               # Eh (gate expansion)
                pl.BlockSpec((w, hw), const2),               # Ew
                pl.BlockSpec((9, hw), const2),               # conv3x3 boundary masks
                pl.BlockSpec((nc, nc), const2),              # per-sample segment mask
                pl.BlockSpec((nc, nc), const2),              # conv1x1 weight (block-diag)
                pl.BlockSpec((nc, 9 * nc), const2),          # conv3x3 taps (block-diag, fused K)
                pl.BlockSpec((nc, 4), const2),               # [b1 | b3 | gamma | beta]
            ],
            out_specs=pl.BlockSpec((nc, hw), lambda i: (i, 0)),
        ),
        compiler_params=pltpu.CompilerParams(dimension_semantics=("parallel",)),
    )(xf, pm, eh, ew, masks, bmask, w1_big, w3_big, chan_vecs)

    return out.reshape(b, c, h, w)


# ----------------------------------------------------------------------------- reference
def ema_reference(x, params, groups=1, eps=1e-5):
    b, c, h, w = x.shape
    cg = c // groups
    gx = x.reshape(b * groups, cg, h, w)
    x_h = gx.mean(axis=3, keepdims=True)                               # (bg, cg, h, 1)
    x_w = jnp.transpose(gx.mean(axis=2, keepdims=True), (0, 1, 3, 2))  # (bg, cg, w, 1)
    cat = jnp.concatenate([x_h, x_w], axis=2)                          # (bg, cg, h+w, 1)
    hw_ = (jnp.einsum("oc,bcpq->bopq", params["w1"], cat)
           + params["b1"][None, :, None, None])
    xh, xw = hw_[:, :, :h, :], hw_[:, :, h:, :]
    xg = gx * jax.nn.sigmoid(xh) * jax.nn.sigmoid(jnp.transpose(xw, (0, 1, 3, 2)))
    mu = xg.mean(axis=(2, 3), keepdims=True)
    var = ((xg - mu) ** 2).mean(axis=(2, 3), keepdims=True)
    x1 = ((xg - mu) / jnp.sqrt(var + eps)
          * params["gamma"][None, :, None, None] + params["beta"][None, :, None, None])
    x2 = lax.conv_general_dilated(gx, params["w3"], (1, 1), "SAME",
                                  dimension_numbers=("NCHW", "OIHW", "NCHW"))
    x2 = x2 + params["b3"][None, :, None, None]
    sm1 = jax.nn.softmax(x1.mean(axis=(2, 3)), axis=-1)                # (bg, cg)
    sm2 = jax.nn.softmax(x2.mean(axis=(2, 3)), axis=-1)
    x12 = x2.reshape(b * groups, cg, h * w)
    x22 = x1.reshape(b * groups, cg, h * w)
    wts = jnp.einsum("bc,bcl->bl", sm1, x12) + jnp.einsum("bc,bcl->bl", sm2, x22)
    out = gx * jax.nn.sigmoid(wts).reshape(b * groups, 1, h, w)
    return out.reshape(b, c, h, w)


# ----------------------------------------------------------------------------- main
if __name__ == "__main__":
    B, C, H, W = 2, 8, 16, 16
    GROUPS = 1            # factor=1 (PyTorch default)
    CG = C // GROUPS

    key = jax.random.PRNGKey(0)
    kx, k1, kb1, k3, kb3, kg, kb = jax.random.split(key, 7)

    x = jax.random.normal(kx, (B, C, H, W), dtype=jnp.float32)
    params = {
        "w1": 0.2 * jax.random.normal(k1, (CG, CG), dtype=jnp.float32),
        "b1": 0.1 * jax.random.normal(kb1, (CG,), dtype=jnp.float32),
        "w3": 0.2 * jax.random.normal(k3, (CG, CG, 3, 3), dtype=jnp.float32),
        "b3": 0.1 * jax.random.normal(kb3, (CG,), dtype=jnp.float32),
        "gamma": 1.0 + 0.1 * jax.random.normal(kg, (CG,), dtype=jnp.float32),
        "beta": 0.1 * jax.random.normal(kb, (CG,), dtype=jnp.float32),
    }

    out = jax.block_until_ready(ema_forward(x, params, groups=GROUPS))
    ref = jax.block_until_ready(ema_reference(x, params, groups=GROUPS))

    err = float(jnp.max(jnp.abs(out - ref)))
    assert out.shape == (B, C, H, W)
    assert err < 1e-4, f"max abs error {err}"
    print("KERNEL_OK")
</pallas_src>

<mosaic_0001>
module attributes {stable_mosaic.version = 11 : i64} {
  func.func @_ema_kernel(%arg0: i32, %arg1: memref<8x256xf32, #tpu.memory_space<vmem>>, %arg2: memref<256x32xf32, #tpu.memory_space<vmem>>, %arg3: memref<16x256xf32, #tpu.memory_space<vmem>>, %arg4: memref<16x256xf32, #tpu.memory_space<vmem>>, %arg5: memref<9x256xf32, #tpu.memory_space<vmem>>, %arg6: memref<8x8xf32, #tpu.memory_space<vmem>>, %arg7: memref<8x8xf32, #tpu.memory_space<vmem>>, %arg8: memref<8x72xf32, #tpu.memory_space<vmem>>, %arg9: memref<8x4xf32, #tpu.memory_space<vmem>>, %arg10: memref<8x256xf32, #tpu.memory_space<vmem>>) attributes {dimension_semantics = [#tpu.dimension_semantics<parallel>], iteration_bounds = array<i64: 2>, scalar_prefetch = 0 : i64, scratch_operands = 0 : i64, tpu.core_type = #tpu.core_type<tc>, window_params = [{transform_indices = @transform_0, window_bounds = array<i64: 8, 256>}, {pipeline_mode = #tpu.pipeline_mode<synchronous>, transform_indices = @transform_1, window_bounds = array<i64: 256, 32>}, {pipeline_mode = #tpu.pipeline_mode<synchronous>, transform_indices = @transform_2, window_bounds = array<i64: 16, 256>}, {pipeline_mode = #tpu.pipeline_mode<synchronous>, transform_indices = @transform_3, window_bounds = array<i64: 16, 256>}, {pipeline_mode = #tpu.pipeline_mode<synchronous>, transform_indices = @transform_4, window_bounds = array<i64: 9, 256>}, {pipeline_mode = #tpu.pipeline_mode<synchronous>, transform_indices = @transform_5, window_bounds = array<i64: 8, 8>}, {pipeline_mode = #tpu.pipeline_mode<synchronous>, transform_indices = @transform_6, window_bounds = array<i64: 8, 8>}, {pipeline_mode = #tpu.pipeline_mode<synchronous>, transform_indices = @transform_7, window_bounds = array<i64: 8, 72>}, {pipeline_mode = #tpu.pipeline_mode<synchronous>, transform_indices = @transform_8, window_bounds = array<i64: 8, 4>}, {transform_indices = @transform_9, window_bounds = array<i64: 8, 256>}]} {
    %c0 = arith.constant 0 : index
    %c0_0 = arith.constant 0 : index
    %0 = vector.load %arg1[%c0, %c0_0] : memref<8x256xf32, #tpu.memory_space<vmem>>, vector<8x256xf32>
    %c0_1 = arith.constant 0 : index
    %c0_2 = arith.constant 0 : index
    %1 = vector.load %arg9[%c0_1, %c0_2] : memref<8x4xf32, #tpu.memory_space<vmem>>, vector<8x4xf32>
    %2 = vector.extract_strided_slice %1 {offsets = [0, 0], sizes = [8, 1], strides = [1, 1]} : vector<8x4xf32> to vector<8x1xf32>
    %3 = vector.extract_strided_slice %1 {offsets = [0, 1], sizes = [8, 1], strides = [1, 1]} : vector<8x4xf32> to vector<8x1xf32>
    %4 = vector.extract_strided_slice %1 {offsets = [0, 2], sizes = [8, 1], strides = [1, 1]} : vector<8x4xf32> to vector<8x1xf32>
    %5 = vector.extract_strided_slice %1 {offsets = [0, 3], sizes = [8, 1], strides = [1, 1]} : vector<8x4xf32> to vector<8x1xf32>
    %c0_3 = arith.constant 0 : index
    %c0_4 = arith.constant 0 : index
    %6 = vector.load %arg2[%c0_3, %c0_4] : memref<256x32xf32, #tpu.memory_space<vmem>>, vector<256x32xf32>
    %cst = arith.constant dense<0.000000e+00> : vector<8x32xf32>
    %7 = tpu.matmul %0, %6, %cst {dimension_numbers = #tpu.dot_dimension_numbers<[1], [0], [0], [1], [0, 0, 1, 1], [], []>} : vector<8x256xf32>, vector<256x32xf32>, vector<8x32xf32> -> vector<8x32xf32>
    %c0_5 = arith.constant 0 : index
    %c0_6 = arith.constant 0 : index
    %8 = vector.load %arg7[%c0_5, %c0_6] : memref<8x8xf32, #tpu.memory_space<vmem>>, vector<8x8xf32>
    %cst_7 = arith.constant dense<0.000000e+00> : vector<8x32xf32>
    %9 = tpu.matmul %8, %7, %cst_7 {dimension_numbers = #tpu.dot_dimension_numbers<[1], [0], [0], [1], [0, 0, 1, 1], [], []>} : vector<8x8xf32>, vector<8x32xf32>, vector<8x32xf32> -> vector<8x32xf32>
    %10 = vector.broadcast %2 : vector<8x1xf32> to vector<8x32xf32>
    %11 = arith.addf %9, %10 : vector<8x32xf32>
    %12 = vector.extract_strided_slice %11 {offsets = [0, 0], sizes = [8, 16], strides = [1, 1]} : vector<8x32xf32> to vector<8x16xf32>
    %13 = arith.negf %12 : vector<8x16xf32>
    %14 = math.exp %13 : vector<8x16xf32>
    %cst_8 = arith.constant 1.000000e+00 : f32
    %15 = vector.broadcast %cst_8 : f32 to vector<8x16xf32>
    %16 = arith.addf %15, %14 : vector<8x16xf32>
    %17 = arith.divf %15, %16 : vector<8x16xf32>
    %18 = vector.extract_strided_slice %11 {offsets = [0, 16], sizes = [8, 16], strides = [1, 1]} : vector<8x32xf32> to vector<8x16xf32>
    %19 = arith.negf %18 : vector<8x16xf32>
    %20 = math.exp %19 : vector<8x16xf32>
    %cst_9 = arith.constant 1.000000e+00 : f32
    %21 = vector.broadcast %cst_9 : f32 to vector<8x16xf32>
    %22 = arith.addf %21, %20 : vector<8x16xf32>
    %23 = arith.divf %21, %22 : vector<8x16xf32>
    %c0_10 = arith.constant 0 : index
    %c0_11 = arith.constant 0 : index
    %24 = vector.load %arg3[%c0_10, %c0_11] : memref<16x256xf32, #tpu.memory_space<vmem>>, vector<16x256xf32>
    %cst_12 = arith.constant dense<0.000000e+00> : vector<8x256xf32>
    %25 = tpu.matmul %17, %24, %cst_12 {dimension_numbers = #tpu.dot_dimension_numbers<[1], [0], [0], [1], [0, 0, 1, 1], [], []>} : vector<8x16xf32>, vector<16x256xf32>, vector<8x256xf32> -> vector<8x256xf32>
    %c0_13 = arith.constant 0 : index
    %c0_14 = arith.constant 0 : index
    %26 = vector.load %arg4[%c0_13, %c0_14] : memref<16x256xf32, #tpu.memory_space<vmem>>, vector<16x256xf32>
    %cst_15 = arith.constant dense<0.000000e+00> : vector<8x256xf32>
    %27 = tpu.matmul %23, %26, %cst_15 {dimension_numbers = #tpu.dot_dimension_numbers<[1], [0], [0], [1], [0, 0, 1, 1], [], []>} : vector<8x16xf32>, vector<16x256xf32>, vector<8x256xf32> -> vector<8x256xf32>
    %28 = arith.mulf %25, %27 : vector<8x256xf32>
    %29 = arith.mulf %0, %28 : vector<8x256xf32>
    %cst_16 = arith.constant dense<0.000000e+00> : vector<8xf32>
    %30 = vector.multi_reduction <add>, %29, %cst_16 [1] : vector<8x256xf32> to vector<8xf32>
    %31 = vector.shape_cast %30 : vector<8xf32> to vector<8x1xf32>
    %cst_17 = arith.constant 2.560000e+02 : f32
    %32 = vector.broadcast %cst_17 : f32 to vector<8x1xf32>
    %33 = arith.divf %31, %32 : vector<8x1xf32>
    %34 = vector.broadcast %33 : vector<8x1xf32> to vector<8x256xf32>
    %35 = arith.subf %29, %34 : vector<8x256xf32>
    %36 = arith.mulf %35, %35 : vector<8x256xf32>
    %cst_18 = arith.constant dense<0.000000e+00> : vector<8xf32>
    %37 = vector.multi_reduction <add>, %36, %cst_18 [1] : vector<8x256xf32> to vector<8xf32>
    %38 = vector.shape_cast %37 : vector<8xf32> to vector<8x1xf32>
    %cst_19 = arith.constant 2.560000e+02 : f32
    %39 = vector.broadcast %cst_19 : f32 to vector<8x1xf32>
    %40 = arith.divf %38, %39 : vector<8x1xf32>
    %41 = vector.broadcast %33 : vector<8x1xf32> to vector<8x256xf32>
    %42 = arith.subf %29, %41 : vector<8x256xf32>
    %cst_20 = arith.constant 9.99999974E-6 : f32
    %43 = vector.broadcast %cst_20 : f32 to vector<8x1xf32>
    %44 = arith.addf %40, %43 : vector<8x1xf32>
    %45 = math.rsqrt %44 : vector<8x1xf32>
    %46 = vector.broadcast %45 : vector<8x1xf32> to vector<8x256xf32>
    %47 = arith.mulf %42, %46 : vector<8x256xf32>
    %48 = vector.broadcast %4 : vector<8x1xf32> to vector<8x256xf32>
    %49 = arith.mulf %47, %48 : vector<8x256xf32>
    %50 = vector.broadcast %5 : vector<8x1xf32> to vector<8x256xf32>
    %51 = arith.addf %49, %50 : vector<8x256xf32>
    %52 = vector.extract_strided_slice %0 {offsets = [0, 239], sizes = [8, 17], strides = [1, 1]} : vector<8x256xf32> to vector<8x17xf32>
    %53 = vector.extract_strided_slice %0 {offsets = [0, 0], sizes = [8, 239], strides = [1, 1]} : vector<8x256xf32> to vector<8x239xf32>
    %54 = tpu.concatenate %52, %53 in 1 : vector<8x17xf32>, vector<8x239xf32> -> vector<8x256xf32>
    %c0_21 = arith.constant 0 : index
    %c0_22 = arith.constant 0 : index
    %55 = vector.load %arg5[%c0_21, %c0_22] : memref<9x256xf32, #tpu.memory_space<vmem>>, vector<1x256xf32>
    %56 = vector.broadcast %55 : vector<1x256xf32> to vector<8x256xf32>
    %57 = arith.mulf %54, %56 : vector<8x256xf32>
    %58 = vector.extract_strided_slice %0 {offsets = [0, 240], sizes = [8, 16], strides = [1, 1]} : vector<8x256xf32> to vector<8x16xf32>
    %59 = vector.extract_strided_slice %0 {offsets = [0, 0], sizes = [8, 240], strides = [1, 1]} : vector<8x256xf32> to vector<8x240xf32>
    %60 = tpu.concatenate %58, %59 in 1 : vector<8x16xf32>, vector<8x240xf32> -> vector<8x256xf32>
    %c1 = arith.constant 1 : index
    %c0_23 = arith.constant 0 : index
    %61 = vector.load %arg5[%c1, %c0_23] : memref<9x256xf32, #tpu.memory_space<vmem>>, vector<1x256xf32>
    %62 = vector.broadcast %61 : vector<1x256xf32> to vector<8x256xf32>
    %63 = arith.mulf %60, %62 : vector<8x256xf32>
    %64 = vector.extract_strided_slice %0 {offsets = [0, 241], sizes = [8, 15], strides = [1, 1]} : vector<8x256xf32> to vector<8x15xf32>
    %65 = vector.extract_strided_slice %0 {offsets = [0, 0], sizes = [8, 241], strides = [1, 1]} : vector<8x256xf32> to vector<8x241xf32>
    %66 = tpu.concatenate %64, %65 in 1 : vector<8x15xf32>, vector<8x241xf32> -> vector<8x256xf32>
    %c2 = arith.constant 2 : index
    %c0_24 = arith.constant 0 : index
    %67 = vector.load %arg5[%c2, %c0_24] : memref<9x256xf32, #tpu.memory_space<vmem>>, vector<1x256xf32>
    %68 = vector.broadcast %67 : vector<1x256xf32> to vector<8x256xf32>
    %69 = arith.mulf %66, %68 : vector<8x256xf32>
    %70 = vector.extract_strided_slice %0 {offsets = [0, 255], sizes = [8, 1], strides = [1, 1]} : vector<8x256xf32> to vector<8x1xf32>
    %71 = vector.extract_strided_slice %0 {offsets = [0, 0], sizes = [8, 255], strides = [1, 1]} : vector<8x256xf32> to vector<8x255xf32>
    %72 = tpu.concatenate %70, %71 in 1 : vector<8x1xf32>, vector<8x255xf32> -> vector<8x256xf32>
    %c3 = arith.constant 3 : index
    %c0_25 = arith.constant 0 : index
    %73 = vector.load %arg5[%c3, %c0_25] : memref<9x256xf32, #tpu.memory_space<vmem>>, vector<1x256xf32>
    %74 = vector.broadcast %73 : vector<1x256xf32> to vector<8x256xf32>
    %75 = arith.mulf %72, %74 : vector<8x256xf32>
    %76 = vector.extract_strided_slice %0 {offsets = [0, 1], sizes = [8, 255], strides = [1, 1]} : vector<8x256xf32> to vector<8x255xf32>
    %77 = vector.extract_strided_slice %0 {offsets = [0, 0], sizes = [8, 1], strides = [1, 1]} : vector<8x256xf32> to vector<8x1xf32>
    %78 = tpu.concatenate %76, %77 in 1 : vector<8x255xf32>, vector<8x1xf32> -> vector<8x256xf32>
    %c5 = arith.constant 5 : index
    %c0_26 = arith.constant 0 : index
    %79 = vector.load %arg5[%c5, %c0_26] : memref<9x256xf32, #tpu.memory_space<vmem>>, vector<1x256xf32>
    %80 = vector.broadcast %79 : vector<1x256xf32> to vector<8x256xf32>
    %81 = arith.mulf %78, %80 : vector<8x256xf32>
    %82 = vector.extract_strided_slice %0 {offsets = [0, 15], sizes = [8, 241], strides = [1, 1]} : vector<8x256xf32> to vector<8x241xf32>
    %83 = vector.extract_strided_slice %0 {offsets = [0, 0], sizes = [8, 15], strides = [1, 1]} : vector<8x256xf32> to vector<8x15xf32>
    %84 = tpu.concatenate %82, %83 in 1 : vector<8x241xf32>, vector<8x15xf32> -> vector<8x256xf32>
    %c6 = arith.constant 6 : index
    %c0_27 = arith.constant 0 : index
    %85 = vector.load %arg5[%c6, %c0_27] : memref<9x256xf32, #tpu.memory_space<vmem>>, vector<1x256xf32>
    %86 = vector.broadcast %85 : vector<1x256xf32> to vector<8x256xf32>
    %87 = arith.mulf %84, %86 : vector<8x256xf32>
    %88 = vector.extract_strided_slice %0 {offsets = [0, 16], sizes = [8, 240], strides = [1, 1]} : vector<8x256xf32> to vector<8x240xf32>
    %89 = vector.extract_strided_slice %0 {offsets = [0, 0], sizes = [8, 16], strides = [1, 1]} : vector<8x256xf32> to vector<8x16xf32>
    %90 = tpu.concatenate %88, %89 in 1 : vector<8x240xf32>, vector<8x16xf32> -> vector<8x256xf32>
    %c7 = arith.constant 7 : index
    %c0_28 = arith.constant 0 : index
    %91 = vector.load %arg5[%c7, %c0_28] : memref<9x256xf32, #tpu.memory_space<vmem>>, vector<1x256xf32>
    %92 = vector.broadcast %91 : vector<1x256xf32> to vector<8x256xf32>
    %93 = arith.mulf %90, %92 : vector<8x256xf32>
    %94 = vector.extract_strided_slice %0 {offsets = [0, 17], sizes = [8, 239], strides = [1, 1]} : vector<8x256xf32> to vector<8x239xf32>
    %95 = vector.extract_strided_slice %0 {offsets = [0, 0], sizes = [8, 17], strides = [1, 1]} : vector<8x256xf32> to vector<8x17xf32>
    %96 = tpu.concatenate %94, %95 in 1 : vector<8x239xf32>, vector<8x17xf32> -> vector<8x256xf32>
    %c8 = arith.constant 8 : index
    %c0_29 = arith.constant 0 : index
    %97 = vector.load %arg5[%c8, %c0_29] : memref<9x256xf32, #tpu.memory_space<vmem>>, vector<1x256xf32>
    %98 = vector.broadcast %97 : vector<1x256xf32> to vector<8x256xf32>
    %99 = arith.mulf %96, %98 : vector<8x256xf32>
    %100 = tpu.concatenate %57, %63, %69, %75, %0, %81, %87, %93, %99 in 0 : vector<8x256xf32>, vector<8x256xf32>, vector<8x256xf32>, vector<8x256xf32>, vector<8x256xf32>, vector<8x256xf32>, vector<8x256xf32>, vector<8x256xf32>, vector<8x256xf32> -> vector<72x256xf32>
    %c0_30 = arith.constant 0 : index
    %c0_31 = arith.constant 0 : index
    %101 = vector.load %arg8[%c0_30, %c0_31] : memref<8x72xf32, #tpu.memory_space<vmem>>, vector<8x72xf32>
    %cst_32 = arith.constant dense<0.000000e+00> : vector<8x256xf32>
    %102 = tpu.matmul %101, %100, %cst_32 {dimension_numbers = #tpu.dot_dimension_numbers<[1], [0], [0], [1], [0, 0, 1, 1], [], []>} : vector<8x72xf32>, vector<72x256xf32>, vector<8x256xf32> -> vector<8x256xf32>
    %103 = vector.broadcast %3 : vector<8x1xf32> to vector<8x256xf32>
    %104 = arith.addf %102, %103 : vector<8x256xf32>
    %cst_33 = arith.constant dense<0.000000e+00> : vector<8xf32>
    %105 = vector.multi_reduction <add>, %51, %cst_33 [1] : vector<8x256xf32> to vector<8xf32>
    %106 = vector.shape_cast %105 : vector<8xf32> to vector<8x1xf32>
    %cst_34 = arith.constant 2.560000e+02 : f32
    %107 = vector.broadcast %cst_34 : f32 to vector<8x1xf32>
    %108 = arith.divf %106, %107 : vector<8x1xf32>
    %cst_35 = arith.constant dense<0.000000e+00> : vector<8xf32>
    %109 = vector.multi_reduction <add>, %104, %cst_35 [1] : vector<8x256xf32> to vector<8xf32>
    %110 = vector.shape_cast %109 : vector<8xf32> to vector<8x1xf32>
    %cst_36 = arith.constant 2.560000e+02 : f32
    %111 = vector.broadcast %cst_36 : f32 to vector<8x1xf32>
    %112 = arith.divf %110, %111 : vector<8x1xf32>
    %113 = vector.shape_cast %108 : vector<8x1xf32> to vector<1x8x1xf32>
    %cst_37 = arith.constant dense<0xFF800000> : vector<1xf32>
    %114 = vector.multi_reduction <maximumf>, %113, %cst_37 [1, 2] : vector<1x8x1xf32> to vector<1xf32>
    %115 = vector.shape_cast %114 : vector<1xf32> to vector<1x1x1xf32>
    %116 = vector.extract %115[0, 0, 0] : f32 from vector<1x1x1xf32>
    %117 = vector.broadcast %116 : f32 to vector<1x1xf32>
    %118 = vector.broadcast %117 : vector<1x1xf32> to vector<8x1xf32>
    %119 = arith.subf %108, %118 : vector<8x1xf32>
    %120 = math.exp %119 : vector<8x1xf32>
    %121 = vector.shape_cast %112 : vector<8x1xf32> to vector<1x8x1xf32>
    %cst_38 = arith.constant dense<0xFF800000> : vector<1xf32>
    %122 = vector.multi_reduction <maximumf>, %121, %cst_38 [1, 2] : vector<1x8x1xf32> to vector<1xf32>
    %123 = vector.shape_cast %122 : vector<1xf32> to vector<1x1x1xf32>
    %124 = vector.extract %123[0, 0, 0] : f32 from vector<1x1x1xf32>
    %125 = vector.broadcast %124 : f32 to vector<1x1xf32>
    %126 = vector.broadcast %125 : vector<1x1xf32> to vector<8x1xf32>
    %127 = arith.subf %112, %126 : vector<8x1xf32>
    %128 = math.exp %127 : vector<8x1xf32>
    %c0_39 = arith.constant 0 : index
    %c0_40 = arith.constant 0 : index
    %129 = vector.load %arg6[%c0_39, %c0_40] : memref<8x8xf32, #tpu.memory_space<vmem>>, vector<8x8xf32>
    %130 = tpu.concatenate %120, %128 in 1 : vector<8x1xf32>, vector<8x1xf32> -> vector<8x2xf32>
    %cst_41 = arith.constant dense<0.000000e+00> : vector<8x2xf32>
    %131 = tpu.matmul %129, %130, %cst_41 {dimension_numbers = #tpu.dot_dimension_numbers<[1], [0], [0], [1], [0, 0, 1, 1], [], []>} : vector<8x8xf32>, vector<8x2xf32>, vector<8x2xf32> -> vector<8x2xf32>
    %132 = vector.extract_strided_slice %131 {offsets = [0, 0], sizes = [8, 1], strides = [1, 1]} : vector<8x2xf32> to vector<8x1xf32>
    %133 = arith.divf %120, %132 : vector<8x1xf32>
    %134 = vector.extract_strided_slice %131 {offsets = [0, 1], sizes = [8, 1], strides = [1, 1]} : vector<8x2xf32> to vector<8x1xf32>
    %135 = arith.divf %128, %134 : vector<8x1xf32>
    %136 = vector.broadcast %133 : vector<8x1xf32> to vector<8x256xf32>
    %137 = arith.mulf %136, %104 : vector<8x256xf32>
    %138 = vector.broadcast %135 : vector<8x1xf32> to vector<8x256xf32>
    %139 = arith.mulf %138, %51 : vector<8x256xf32>
    %140 = arith.addf %137, %139 : vector<8x256xf32>
    %cst_42 = arith.constant dense<0.000000e+00> : vector<8x256xf32>
    %141 = tpu.matmul %129, %140, %cst_42 {dimension_numbers = #tpu.dot_dimension_numbers<[1], [0], [0], [1], [0, 0, 1, 1], [], []>} : vector<8x8xf32>, vector<8x256xf32>, vector<8x256xf32> -> vector<8x256xf32>
    %142 = arith.negf %141 : vector<8x256xf32>
    %143 = math.exp %142 : vector<8x256xf32>
    %cst_43 = arith.constant 1.000000e+00 : f32
    %144 = vector.broadcast %cst_43 : f32 to vector<8x256xf32>
    %145 = arith.addf %144, %143 : vector<8x256xf32>
    %146 = arith.divf %144, %145 : vector<8x256xf32>
    %147 = arith.mulf %0, %146 : vector<8x256xf32>
    %c0_44 = arith.constant 0 : index
    %c0_45 = arith.constant 0 : index
    %148 = vector.load %arg10[%c0_44, %c0_45] : memref<8x256xf32, #tpu.memory_space<vmem>>, vector<8x256xf32>
    tpu.vector_store %arg10[%c0_44, %c0_45], %147 {strides = array<i32>} : memref<8x256xf32, #tpu.memory_space<vmem>>, vector<8x256xf32>,
    return
  }
  func.func @transform_0(%arg0: i32) -> (i32, i32) {
    %c0_i32 = arith.constant 0 : i32
    %c0_i32_0 = arith.constant 0 : i32
    return %arg0, %c0_i32 : i32, i32
  }
  func.func @transform_1(%arg0: i32) -> (i32, i32) {
    %c0_i32 = arith.constant 0 : i32
    %c0_i32_0 = arith.constant 0 : i32
    %c0_i32_1 = arith.constant 0 : i32
    return %c0_i32, %c0_i32_0 : i32, i32
  }
  func.func @transform_2(%arg0: i32) -> (i32, i32) {
    %c0_i32 = arith.constant 0 : i32
    %c0_i32_0 = arith.constant 0 : i32
    %c0_i32_1 = arith.constant 0 : i32
    return %c0_i32, %c0_i32_0 : i32, i32
  }
  func.func @transform_3(%arg0: i32) -> (i32, i32) {
    %c0_i32 = arith.constant 0 : i32
    %c0_i32_0 = arith.constant 0 : i32
    %c0_i32_1 = arith.constant 0 : i32
    return %c0_i32, %c0_i32_0 : i32, i32
  }
  func.func @transform_4(%arg0: i32) -> (i32, i32) {
    %c0_i32 = arith.constant 0 : i32
    %c0_i32_0 = arith.constant 0 : i32
    %c0_i32_1 = arith.constant 0 : i32
    return %c0_i32, %c0_i32_0 : i32, i32
  }
  func.func @transform_5(%arg0: i32) -> (i32, i32) {
    %c0_i32 = arith.constant 0 : i32
    %c0_i32_0 = arith.constant 0 : i32
    %c0_i32_1 = arith.constant 0 : i32
    return %c0_i32, %c0_i32_0 : i32, i32
  }
  func.func @transform_6(%arg0: i32) -> (i32, i32) {
    %c0_i32 = arith.constant 0 : i32
    %c0_i32_0 = arith.constant 0 : i32
    %c0_i32_1 = arith.constant 0 : i32
    return %c0_i32, %c0_i32_0 : i32, i32
  }
  func.func @transform_7(%arg0: i32) -> (i32, i32) {
    %c0_i32 = arith.constant 0 : i32
    %c0_i32_0 = arith.constant 0 : i32
    %c0_i32_1 = arith.constant 0 : i32
    return %c0_i32, %c0_i32_0 : i32, i32
  }
  func.func @transform_8(%arg0: i32) -> (i32, i32) {
    %c0_i32 = arith.constant 0 : i32
    %c0_i32_0 = arith.constant 0 : i32
    %c0_i32_1 = arith.constant 0 : i32
    return %c0_i32, %c0_i32_0 : i32, i32
  }
  func.func @transform_9(%arg0: i32) -> (i32, i32) {
    %c0_i32 = arith.constant 0 : i32
    %c0_i32_0 = arith.constant 0 : i32
    return %arg0, %c0_i32 : i32, i32
  }
}

</mosaic_0001>

<bundles_post_ra>
// kernel: ema_forward.1
= control target key start
LH: loop header
LB: loop body
LE: loop exit
PB: predicated region body
PF: predicated region fallthrough
CT: control target
= control target key end

     0   :  { %s1519_s30 = smov 0   ;;  %s1785_s0 = inlined_call_operand.vmem [shape: f32[16,256], index: 0, kind: input, shape index: {}]   ;;  %s1786_s1 = inlined_call_operand.vmem [shape: f32[256,32], index: 1, kind: input, shape index: {}]   ;;  %s1787_s2 = inlined_call_operand.vmem [shape: f32[16,256], index: 2, kind: input, shape index: {}]   ;;  %s1788_s3 = inlined_call_operand.vmem [shape: f32[16,256], index: 3, kind: input, shape index: {}]   ;;  %s1789_s4 = inlined_call_operand.vmem [shape: f32[9,256], index: 4, kind: input, shape index: {}]   ;;  %s1790_s5 = inlined_call_operand.vmem [shape: f32[8,8], index: 5, kind: input, shape index: {}]   ;;  %s1791_s6 = inlined_call_operand.vmem [shape: f32[8,8], index: 6, kind: input, shape index: {}]   ;;  %s1792_s7 = inlined_call_operand.vmem [shape: f32[8,72], index: 7, kind: input, shape index: {}]   ;;  %s1793_s8 = inlined_call_operand.vmem [shape: f32[8,4], index: 8, kind: input, shape index: {}]   ;;  %s1794_s9 = inlined_call_operand.vmem [shape: f32[16,256], index: 9, kind: output, shape index: {}]  }
   0x1 LB: > { %s1261_s10 = sadd.s32 4294967295, %s1453_s30   ;;  %p1265_p0 = scmp.ge.s32.totalorder %s1453_s30, 1  ;;  %s1453_s30 = sphi %s1519_s30, %s19_s30  }
   0x2   : > { %p287_p1 = scmp.lt.s32.totalorder %s1453_s30, 3 }
   0x4   : > { %p288_p2 = pnand %p1265_p0, %p287_p1 }
   0x5   : > { %v352_v0 = vld [vmem:[%s1786_s1 + $0x80] sm:$0xff] (!%p288_p2)  ;;  %v353_v1 = vld [vmem:[%s1786_s1 + $0x88] sm:$0xff] (!%p288_p2)  ;;  %p323_p3 = scmp.lt.s32.totalorder (!%p288_p2), %s1261_s10, 1  ;;  %v354_v5 = vld [vmem:[%s1786_s1 + $0x90] sm:$0xff] (!%p288_p2)  ;;  %v1455_v50 = vmov (!%p288_p2), 0.0   ;;  %vm1456_vm0 = vmmov (!%p288_p2), 0  }
   0x6   : > { %291 = sbr.rel (%p288_p2) target bundleno = 1971 (0x7b3), region = 56  ;;  %v336_v2 = vld [vmem:[%s1786_s1] sm:$0xff] (!%p288_p2)  ;;  %v1339_v3 = vpack.c.bf16 (!%p288_p2), %v353_v1, %v352_v0  ;;  %v337_v4 = vld [vmem:[%s1786_s1 + $0x8] sm:$0xff] (!%p288_p2)  ;;  %v355_v6 = vld [vmem:[%s1786_s1 + $0x98] sm:$0xff] (!%p288_p2)  ;;  %1329 = vmatprep.subr.mxu1 (!%p288_p2), %v1455_v50  ;;  %1331 = vmatprep.mubr.msk.f32.mxu1 (!%p288_p2), %vm1456_vm0, %v1455_v50  ;;  %v1457_v52 = vmov (!%p288_p2), 0   ;;  %vm444_vm1 = vcmask (!%p288_p2), 64512  }
   0x7   : > { %v1341_v7 = vpack.c.bf16 (!%p288_p2), %v337_v4, %v336_v2  ;;  %v1343_v8 = vpack.c.bf16 (!%p288_p2), %v355_v6, %v354_v5  ;;  %v338_v9 = vld [vmem:[%s1786_s1 + $0x10] sm:$0xff] (!%p288_p2)  ;;  %v339_v10 = vld [vmem:[%s1786_s1 + $0x18] sm:$0xff] (!%p288_p2)  ;;  %v356_v11 = vld [vmem:[%s1786_s1 + $0xa0] sm:$0xff] (!%p288_p2)  ;;  %1421 = vset.pattern.permute.xlu0 (!%p288_p2), %v1457_v52  ;;  %vm528_vm2 = vcmask (!%p288_p2), 130048   ;;  %s1459_s28 = smov (!%p288_p2), 17   ;;  %s1460_s29 = smov (!%p288_p2), 16  }
   0x8   : > { %1340 = vmatprep.subr.bf16.mxu0 (!%p288_p2), %v1339_v3  ;;  %v357_v12 = vld [vmem:[%s1786_s1 + $0xa8] sm:$0xff] (!%p288_p2)  ;;  %v1345_v13 = vpack.c.bf16 (!%p288_p2), %v339_v10, %v338_v9  ;;  %v340_v15 = vld [vmem:[%s1786_s1 + $0x20] sm:$0xff] (!%p288_p2)  ;;  %v358_v17 = vld [vmem:[%s1786_s1 + $0xb0] sm:$0xff] (!%p288_p2)  ;;  %s1461_s11 = smov (!%p288_p2), 15   ;;  %s1462_s13 = smov (!%p288_p2), 1   ;;  %vm722_vm3 = vcmask (!%p288_p2), 138240  }
   0x9   : > { %1342 = vmatpush3.bf16.msra.mxu0 (!%p288_p2), %v1341_v7  ;;  %v1347_v14 = vpack.c.bf16 (!%p288_p2), %v357_v12, %v356_v11  ;;  %v341_v16 = vld [vmem:[%s1786_s1 + $0x28] sm:$0xff] (!%p288_p2)  ;;  %v359_v18 = vld [vmem:[%s1786_s1 + $0xb8] sm:$0xff] (!%p288_p2)  ;;  %v342_v21 = vld [vmem:[%s1786_s1 + $0x30] sm:$0xff] (!%p288_p2)  ;;  %s1463_s14 = smov (!%p288_p2), 127   ;;  %s1464_s15 = smov (!%p288_p2), 113   ;;  %vm770_vm4 = vcmask (!%p288_p2), 121856  }
   0xa   : > { %1344 = vmatprep.subr.bf16.mxu0 (!%p288_p2), %v1343_v8  ;;  %v1349_v19 = vpack.c.bf16 (!%p288_p2), %v341_v16, %v340_v15  ;;  %v1351_v20 = vpack.c.bf16 (!%p288_p2), %v359_v18, %v358_v17  ;;  %v343_v22 = vld [vmem:[%s1786_s1 + $0x38] sm:$0xff] (!%p288_p2)  ;;  %v360_v23 = vld [vmem:[%s1786_s1 + $0xc0] sm:$0xff] (!%p288_p2)  ;;  %v361_v24 = vld [vmem:[%s1786_s1 + $0xc8] sm:$0xff] (!%p288_p2)  ;;  %s1465_s16 = smov (!%p288_p2), 111   ;;  %v729_v15 = vlaneseq (!%p288_p2)  ;;  %vm795_vm5 = vcmask (!%p288_p2), 7168  }
   0xb   : > { %v1353_v26 = vpack.c.bf16 (!%p288_p2), %v343_v22, %v342_v21  ;;  %v1355_v27 = vpack.c.bf16 (!%p288_p2), %v361_v24, %v360_v23  ;;  %v344_v28 = vld [vmem:[%s1786_s1 + $0x40] sm:$0xff] (!%p288_p2)  ;;  %v345_v29 = vld [vmem:[%s1786_s1 + $0x48] sm:$0xff] (!%p288_p2)  ;;  %v362_v30 = vld [vmem:[%s1786_s1 + $0xd0] sm:$0xff] (!%p288_p2)  ;;  %vm819_vm6 = vcmask (!%p288_p2), 1039360   ;;  %vm844_vm7 = vcmask (!%p288_p2), 924672  }
   0xc   : > { %v363_v31 = vld [vmem:[%s1786_s1 + $0xd8] sm:$0xff] (!%p288_p2)  ;;  %v1357_v32 = vpack.c.bf16 (!%p288_p2), %v345_v29, %v344_v28  ;;  %v346_v34 = vld [vmem:[%s1786_s1 + $0x50] sm:$0xff] (!%p288_p2)  ;;  %v364_v36 = vld [vmem:[%s1786_s1 + $0xe0] sm:$0xff] (!%p288_p2)  ;;  %v730_v17 = vshrl.u32 (!%p288_p2), %v729_v15, 7  ;;  %vm869_vm8 = vcmask (!%p288_p2), 916480   ;;  %vm894_vm9 = vcmask (!%p288_p2), 908288  }
   0xd   : > { %s1796_s10 = smov (!%p323_p3, %s1261_s10), 1  ;;  %1346 = vmatpush3.bf16.msra.mxu0 %v1345_v13  ;;  %v1359_v33 = vpack.c.bf16 %v363_v31, %v362_v30  ;;  %v347_v35 = vld [vmem:[%s1786_s1 + $0x58] sm:$0xff]  ;;  %v365_v37 = vld [vmem:[%s1786_s1 + $0xe8] sm:$0xff]  ;;  %v348_v40 = vld [vmem:[%s1786_s1 + $0x60] sm:$0xff]  ;;  %vm920_vm10 = vcmask 588800  }
   0xe   : > { %s1288_s12 = sshll.u32 %s1796_s10, 4  ;;  %1348 = vmatprep.subr.bf16.mxu0 %v1347_v14  ;;  %v1361_v38 = vpack.c.bf16 %v347_v35, %v346_v34  ;;  %v1363_v39 = vpack.c.bf16 %v365_v37, %v364_v36  ;;  %v349_v41 = vld [vmem:[%s1786_s1 + $0x68] sm:$0xff]  ;;  %v366_v42 = vld [vmem:[%s1786_s1 + $0xf0] sm:$0xff]  ;;  %v367_v43 = vld [vmem:[%s1786_s1 + $0xf8] sm:$0xff]  ;;  %v1709_v21 = vsub.s32 1, %v730_v17 }
   0xf   : > { %s1577_s23 = scalar_lea.vmem %s1785_s0, %s1288_s12  ;;  %v1365_v44 = vpack.c.bf16 %v349_v41, %v348_v40  ;;  %v1367_v45 = vpack.c.bf16 %v367_v43, %v366_v42  ;;  %v350_v46 = vld [vmem:[%s1786_s1 + $0x70] sm:$0xff]  ;;  %v351_v47 = vld [vmem:[%s1786_s1 + $0x78] sm:$0xff]  ;;  %v1648_v51 = vld [vmem:[%s1793_s8] sm:$0xff]  ;;  %s332_s24 = scalar_lea.vmem %s1794_s9, %s1288_s12 }
  0x10   : > { %v1592_v25 = vld [vmem:[%s1577_s23 + $0x8] sm:$0xff]  ;;  %v1369_v48 = vpack.c.bf16 %v351_v47, %v350_v46  ;;  %v1638_v49 = vld [vmem:[%s1577_s23] sm:$0xff]  ;;  %441 = vperm.xlu0 %1421, %v1648_v51   ;;  %v527_v58 = vld [vmem:[%s1787_s2 + $0x18] sm:$0xff]  ;;  %s1458_s23 = smov 112  }
  0x11   : > { %432 = vmatprep.mubr.f32.mxu0 %v1592_v25  ;;  %1350 = vmatpush3.bf16.msra.mxu0 %v1349_v19  ;;  %v438_v56 = vld [vmem:[%s1791_s6] sm:$0xff]  ;;  %v525_v57 = vld [vmem:[%s1787_s2 + $0x8] sm:$0xff]  ;;  %v526_v61 = vld [vmem:[%s1787_s2 + $0x10] sm:$0xff] }
  0x12   : > { %1352 = vmatprep.subr.bf16.mxu0 %v1351_v20  ;;  %v524_v59 = vld [vmem:[%s1787_s2] sm:$0xff]  ;;  %v1371_v60 = vpack.c.bf16 %v527_v58, %v525_v57  ;;  %v604_v63 = vld [vmem:[%s1788_s3 + $0x8] sm:$0xff]  ;;  %v606_v0 = vld [vmem:[%s1788_s3 + $0x18] sm:$0xff]  ;;  %716 = vrot.lane.b32.xlu1 %v1592_v25, %s1459_s28  ;;  %v1707_v20 = vsub.s32 0, %v730_v17 }
  0x13   : > { %v1373_v62 = vpack.c.bf16 %v526_v61, %v524_v59  ;;  %v1375_v1 = vpack.c.bf16 %v606_v0, %v604_v63  ;;  %v603_v9 = vld [vmem:[%s1788_s3] sm:$0xff]  ;;  %v605_v10 = vld [vmem:[%s1788_s3 + $0x10] sm:$0xff] }
  0x14   : > { %v1377_v11 = vpack.c.bf16 %v605_v10, %v603_v9  ;;  %v727_v18 = vld [vmem:[%s1789_s4] ss:$8 sm:$0x3]  ;;  %v1274_v19 = vld [vmem:[%s1789_s4 + $0x1] ss:$8 sm:$0x3] }
  0x15   : > { %1354 = vmatpush3.bf16.msra.mxu0 %v1353_v26  ;;  %v732_v29 = vrot.slane %v727_v18, %v1707_v20  ;;  %v736_v30 = vrot.slane %v727_v18, %v1709_v21  ;;  %v756_v31 = vrot.slane %v1274_v19, %v1707_v20  ;;  %v1276_v42 = vld [vmem:[%s1789_s4 + $0x3] ss:$8 sm:$0x3]  ;;  %v1277_v58 = vld [vmem:[%s1789_s4 + $0x5] ss:$8 sm:$0x3] }
  0x16   : > { %1356 = vmatprep.subr.bf16.mxu0 %v1355_v27  ;;  %720 = vrot.lane.b32.xlu1 %v1638_v49, %s1459_s28  ;;  %v1278_v10 = vld [vmem:[%s1789_s4 + $0x6] ss:$8 sm:$0x3] }
  0x17   : > { %v860_v17 = vrot.slane %v1278_v10, %v1709_v21 }
  0x19   : > { %1358 = vmatpush3.bf16.msra.mxu0 %v1357_v32  ;;  %v760_v32 = vrot.slane %v1274_v19, %v1709_v21 }
  0x1a   : > { %1360 = vmatprep.subr.bf16.mxu0 %v1359_v33  ;;  %744 = vrot.lane.b32.xlu1 %v1638_v49, %s1460_s29 }
  0x1d   : > { %1362 = vmatpush3.bf16.msra.mxu0 %v1361_v38 }
  0x1e   : > { %1364 = vmatprep.subr.bf16.mxu0 %v1363_v39  ;;  %768 = vrot.lane.b32.xlu1 %v1638_v49, %s1461_s11  ;;  %v1275_v39 = vld [vmem:[%s1789_s4 + $0x2] ss:$8 sm:$0x3] }
  0x1f   : > { %v785_v46 = vrot.slane %v1275_v39, %v1709_v21 }
  0x21   : > { %1366 = vmatpush3.bf16.msra.mxu0 %v1365_v44 }
  0x22   : > { %1368 = vmatprep.subr.bf16.mxu0 %v1367_v45  ;;  %793 = vrot.lane.b32.xlu1 %v1638_v49, %s1462_s13  ;;  %v781_v45 = vrot.slane %v1275_v39, %v1707_v20 }
  0x25   : > { %1370 = vmatpush3.bf16.msra.mxu0 %v1369_v48  ;;  %v1466_v48 = vmov 3  }
  0x26   : > { %817 = vrot.lane.b32.xlu1 %v1592_v25, %s1463_s14 }
  0x27   : > { %1423 = vset.pattern.permute.xlu1 %v1466_v48 }
  0x28   : > { %433 = vmatmul.mubr.f32.vlgmr.msra.gmra.mrb[0].mxu0 %v1638_v49 }
  0x29   : > { %1183 = vmatprep.mubr.f32.mxu0 %v1455_v50 }
  0x2a   : > { %842 = vrot.lane.b32.xlu1 %v1592_v25, %s1464_s15 }
  0x2e   : > { %867 = vrot.lane.b32.xlu1 %v1592_v25, %s1458_s23 }
  0x32   : > { %892 = vrot.lane.b32.xlu1 %v1592_v25, %s1465_s16 }
  0x36   : > { %710 = vperm.xlu1 %1423, %v1648_v51  }
  0x84   : > { %v717_v14 = vpop.permute.xlu1 %716 }
  0x88   : > { %v721_v22 = vpop.permute.xlu1 %720 }
  0x89   : > { %v723_v26 = vsel %vm722_vm3, %v721_v22, %v717_v14  ;;  %v726_v27 = vsel %vm722_vm3, %v717_v14, %v721_v22 }
  0x8a   : > { %v739_v33 = vmul.f32 %v732_v29, %v726_v27  ;;  %v740_v34 = vmul.f32 %v736_v30, %v723_v26  ;;  %v1280_v29 = vld [vmem:[%s1789_s4 + $0x10] ss:$8 sm:$0x3] }
  0x8b   : > { %v906_v39 = vrot.slane %v1280_v29, %v1707_v20 }
  0x8c   : > { %v745_v35 = vpop.permute.xlu1 %744 }
  0x8f   : > { %v442_v2 = vpop.permute.xlu0 %441 }
  0x90   : > { %v769_v44 = vpop.permute.xlu1 %768 }
  0x94   : > { %v794_v61 = vpop.permute.xlu1 %793 }
  0xfb   : > { %v1322_v53 = vpop.f32.mrb[0].mxu0 }
  0xfc   : > { %v1323_v54 = vpop.f32.mrb[1].mxu0 }
  0xfd   : > { %v1324_v55 = vadd.f32 %v1323_v54, %v1322_v53 }
  0xff   : > { %1330 = vmatpush3.msra.mxu1 %v1324_v55  ;;  %v806_v55 = vrot.slane %v1276_v42, %v1707_v20 }
 0x100   : > { %1332 = vmatmul.mubr.msk.f32.vlgmr.msra.gmra.mrb[0].mxu1 %vm444_vm1, %v438_v56  ;;  %1372 = vmatprep.subr.bf16.mxu1 %v1371_v60  ;;  %v810_v56 = vrot.slane %v1276_v42, %v1709_v21 }
 0x101   : > { %596 = vmatprep.mubr.f32.mxu1 %v1455_v50  ;;  %1374 = vmatpush1.bf16.msra.mxu1 %v1373_v62 }
 0x102   : > { %1376 = vmatprep.subr.bf16.mxu1 %v1375_v1 }
 0x1d3   : > { %v514_v3 = vpop.f32.mrb[0].mxu1 }
 0x1d4   : > { %v515_v4 = vadd.f32 %v514_v3, %v442_v2  ;;  %v1333_v5 = vpop.f32.mrb[1].mxu1  ;;  %v831_v2 = vrot.slane %v1277_v58, %v1707_v20  ;;  %v835_v3 = vrot.slane %v1277_v58, %v1709_v21  ;;  %v1468_v58 = vmov 2  }
 0x1d5   : > { %v818_v5 = vpop.permute.xlu1 %817  ;;  %1422 = vset.pattern.permute.xlu0 %v1468_v58 }
 0x1d6   : > { %v1271_v6 = vmul.f32 -1.442695, %v515_v4 }
 0x1d8   : > { %1427 = vpow2.f32 %v1271_v6 }
 0x1d9   : > { %v843_v15 = vpop.permute.xlu1 %842 }
 0x1e2   : > { %v1428_v7 = vpop.eup %1427 }
 0x1e3   : > { %v521_v8 = vadd.f32 1.0, %v1428_v7 }
 0x1e5   : > { %1429 = vrcp.f32 %v521_v8 }
 0x1ef   : > { %v1430_v12 = vpop.eup %1429 }
 0x1f0   : > { %607 = vrot.lane.b32.xlu0 %v1430_v12, %s1458_s23  ;;  %1272 = vmatmul.mubr.msk.f32.vlgmr.msra.gmra.mrb[2].mxu1 %vm528_vm2, %v1430_v12 }
 0x1f1   : > { %1378 = vmatpush1.bf16.msra.mxu1 %v1377_v11  ;;  %675 = vmatprep.mubr.f32.mxu1 %v1455_v50 }
 0x1f4   : > { %741 = vrot.lane.b32.xlu0 %v1592_v25, %s1460_s29 }
 0x1f8   : > { %765 = vrot.lane.b32.xlu0 %v1592_v25, %s1461_s11 }
 0x1fc   : > { %790 = vrot.lane.b32.xlu0 %v1592_v25, %s1462_s13 }
 0x200   : > { %815 = vrot.lane.b32.xlu0 %v1638_v49, %s1463_s14 }
 0x204   : > { %840 = vrot.lane.b32.xlu0 %v1638_v49, %s1464_s15 }
 0x208   : > { %865 = vrot.lane.b32.xlu0 %v1638_v49, %s1458_s23 }
 0x20c   : > { %890 = vrot.lane.b32.xlu0 %v1638_v49, %s1465_s16 }
 0x262   : > { %v608_v13 = vpop.permute.xlu0 %607 }
 0x263   : > { %1273 = vmatmul.mubr.msk.f32.vlgmr.msra.gmra.mrb[4].mxu1 %vm528_vm2, %v608_v13  ;;  %v1279_v13 = vld [vmem:[%s1789_s4 + $0x7] ss:$8 sm:$0x3] }
 0x264   : > { %988 = vmatprep.mubr.f32.mxu1 %v1455_v50  ;;  %v885_v26 = vrot.slane %v1279_v13, %v1709_v21 }
 0x266   : > { %v742_v16 = vpop.permute.xlu0 %741 }
 0x267   : > { %v746_v37 = vsel %vm528_vm2, %v745_v35, %v742_v16  ;;  %v749_v38 = vsel %vm528_vm2, %v742_v16, %v745_v35  ;;  %v856_v16 = vrot.slane %v1278_v10, %v1707_v20 }
 0x268   : > { %v763_v40 = vmul.f32 %v756_v31, %v749_v38  ;;  %v764_v41 = vmul.f32 %v760_v32, %v746_v37  ;;  %v868_v32 = vpop.permute.xlu1 %867  ;;  %v910_v37 = vrot.slane %v1280_v29, %v1709_v21 }
 0x26a   : > { %v766_v23 = vpop.permute.xlu0 %765  ;;  %v1381_v43 = vpack.c.bf16 %v763_v40, %v739_v33  ;;  %v1379_v47 = vpack.c.bf16 %v764_v41, %v740_v34 }
 0x26b   : > { %v771_v53 = vsel %vm770_vm4, %v769_v44, %v766_v23  ;;  %v774_v54 = vsel %vm770_vm4, %v766_v23, %v769_v44  ;;  %v881_v23 = vrot.slane %v1279_v13, %v1707_v20 }
 0x26c   : > { %1380 = vmatprep.subr.bf16.mxu1 %v1379_v47  ;;  %v788_v59 = vmul.f32 %v781_v45, %v774_v54  ;;  %v789_v60 = vmul.f32 %v785_v46, %v771_v53  ;;  %v893_v42 = vpop.permute.xlu1 %892  ;;  %v915_v47 = vld [vmem:[%s1792_s7] sm:$0xff] }
 0x26d   : > { %1382 = vmatpush1.bf16.msra.mxu1 %v1381_v43 }
 0x26e   : > { %v791_v36 = vpop.permute.xlu0 %790 }
 0x26f   : > { %v796_v62 = vsel %vm795_vm5, %v794_v61, %v791_v36  ;;  %v799_v63 = vsel %vm795_vm5, %v791_v36, %v794_v61 }
 0x270   : > { %v813_v0 = vmul.f32 %v806_v55, %v799_v63  ;;  %v814_v1 = vmul.f32 %v810_v56, %v796_v62 }
 0x272   : > { %v816_v57 = vpop.permute.xlu0 %815  ;;  %v1385_v4 = vpack.c.bf16 %v813_v0, %v788_v59  ;;  %v1383_v6 = vpack.c.bf16 %v814_v1, %v789_v60  ;;  %v711_v1 = vpop.permute.xlu1 %710 }
 0x273   : > { %v820_v8 = vsel %vm819_vm6, %v816_v57, %v818_v5  ;;  %v824_v9 = vsel %vm819_vm6, %v818_v5, %v816_v57  ;;  %v1467_v57 = vmov 1  }
 0x274   : > { %v838_v11 = vmul.f32 %v831_v2, %v820_v8  ;;  %v839_v12 = vmul.f32 %v835_v3, %v824_v9  ;;  %1384 = vmatprep.subr.bf16.mxu1 %v1383_v6  ;;  %1424 = vset.pattern.permute.xlu1 %v1467_v57 }
 0x275   : > { %1386 = vmatpush1.bf16.msra.mxu1 %v1385_v4 }
 0x276   : > { %v841_v7 = vpop.permute.xlu0 %840  ;;  %v1389_v14 = vpack.c.bf16 %v838_v11, %v1638_v49  ;;  %v1387_v18 = vpack.c.bf16 %v839_v12, %v1592_v25 }
 0x277   : > { %v845_v19 = vsel %vm844_vm7, %v841_v7, %v843_v15  ;;  %v849_v22 = vsel %vm844_vm7, %v843_v15, %v841_v7 }
 0x278   : > { %1388 = vmatprep.subr.bf16.mxu1 %v1387_v18  ;;  %v863_v30 = vmul.f32 %v856_v16, %v845_v19  ;;  %v864_v31 = vmul.f32 %v860_v17, %v849_v22 }
 0x279   : > { %1390 = vmatpush1.bf16.msra.mxu1 %v1389_v14 }
 0x27a   : > { %v866_v27 = vpop.permute.xlu0 %865 }
 0x27b   : > { %v870_v33 = vsel %vm869_vm8, %v866_v27, %v868_v32  ;;  %v874_v34 = vsel %vm869_vm8, %v868_v32, %v866_v27 }
 0x27c   : > { %v888_v35 = vmul.f32 %v881_v23, %v870_v33  ;;  %v889_v36 = vmul.f32 %v885_v26, %v874_v34 }
 0x27e   : > { %v891_v38 = vpop.permute.xlu0 %890  ;;  %v1393_v40 = vpack.c.bf16 %v888_v35, %v863_v30  ;;  %v1391_v41 = vpack.c.bf16 %v889_v36, %v864_v31 }
 0x27f   : > { %v895_v43 = vsel %vm894_vm9, %v891_v38, %v893_v42  ;;  %v899_v44 = vsel %vm894_vm9, %v893_v42, %v891_v38 }
 0x280   : > { %1392 = vmatprep.subr.bf16.mxu1 %v1391_v41  ;;  %v914_v45 = vmul.f32 %v910_v37, %v899_v44  ;;  %v913_v46 = vmul.f32 %v906_v39, %v895_v43 }
 0x281   : > { %1394 = vmatpush1.bf16.msra.mxu1 %v1393_v40 }
 0x282   : > { %940 = vmatprep.subr.mxu1 %v914_v45  ;;  %v1025_v45 = vld [vmem:[%s1790_s5] sm:$0xff] }
 0x285   : > { %941 = vmatpush1.msra.mxu1 %v913_v46 }
 0x286   : > { %1281 = vmatmul.mubr.msk.f32.vlgmr.msra.gmra.mrb[6].mxu1 %vm920_vm10, %v915_v47  ;;  %1334 = vmatprep.subr.mxu1 %v1455_v50 }
 0x287   : > { %1336 = vmatprep.mubr.msk.f32.mxu1 %vm1456_vm0, %v1455_v50 }
 0x2c3   : > { %v1711_v24 = vpop.f32.mrb[2].mxu1 }
 0x2c4   : > { %v1713_v28 = vpop.f32.mrb[3].mxu1 }
 0x336   : > { %v677_v20 = vpop.f32.mrb[4].mxu1 }
 0x337   : > { %v682_v21 = vmul.f32 %v677_v20, %v1711_v24  ;;  %v679_v48 = vpop.f32.mrb[5].mxu1 }
 0x338   : > { %v683_v53 = vmul.f32 %v679_v48, %v1713_v28 }
 0x339   : > { %v684_v54 = vmul.f32 %v682_v21, %v1638_v49 }
 0x33a   : > { %v685_v55 = vmul.f32 %v683_v53, %v1592_v25 }
 0x33c   : > { %v686_v56 = vadd.f32 %v685_v55, %v684_v54 }
 0x33e   : > { %687 = vadd.xlane.f32.xlu0 %v686_v56 }
 0x354   : > { %704 = vperm.xlu0 %1422, %v1648_v51  }
 0x358   : > { %1426 = vset.pattern.permute.xlu0 %v1467_v57 }
 0x359   : > { %v990_v63 = vpop.f32.mrb[6].mxu1 }
 0x35a   : > { %v992_v0 = vpop.f32.mrb[7].mxu1 }
 0x3cb   : > { %v688_v50 = vpop.xlane.xlu0 %687 }
 0x3cc   : > { %v690_v59 = vmul.f32 0.00390625, %v688_v50 }
 0x3ce   : > { %v691_v60 = vsub.f32 %v684_v54, %v690_v59  ;;  %v692_v24 = vsub.f32 %v685_v55, %v690_v59 }
 0x3d0   : > { %v693_v61 = vmul.f32 %v691_v60, %v691_v60  ;;  %v694_v62 = vmul.f32 %v692_v24, %v692_v24 }
 0x3d2   : > { %v695_v28 = vadd.f32 %v694_v62, %v693_v61 }
 0x3d3   : > { %v705_v10 = vpop.permute.xlu0 %704 }
 0x3d4   : > { %696 = vadd.xlane.f32.xlu1 %v695_v28 }
 0x3e5   : > { %917 = vperm.xlu1 %1424, %v1648_v51  }
 0x3e9   : > { %1425 = vset.pattern.permute.xlu1 %v1457_v52 }
 0x461   : > { %v697_v2 = vpop.xlane.xlu1 %696 }
 0x462   : > { %v698_v3 = vmul.f32 0.00390625, %v697_v2 }
 0x464   : > { %v699_v4 = vadd.f32 1e-05, %v698_v3 }
 0x465   : > { %v918_v5 = vpop.permute.xlu1 %917 }
 0x466   : > { %1431 = vrsqrt.f32 %v699_v4  ;;  %v991_v6 = vadd.f32 %v990_v63, %v918_v5  ;;  %v993_v7 = vadd.f32 %v992_v0, %v918_v5 }
 0x468   : > { %v999_v8 = vadd.f32 %v993_v7, %v991_v6 }
 0x46a   : > { %1000 = vadd.xlane.f32.xlu0 %v999_v8 }
 0x470   : > { %v1432_v9 = vpop.eup %1431 }
 0x471   : > { %v701_v11 = vmul.f32 %v1432_v9, %v691_v60  ;;  %v702_v12 = vmul.f32 %v1432_v9, %v692_v24 }
 0x473   : > { %v707_v13 = vmul.f32 %v705_v10, %v701_v11  ;;  %v708_v51 = vmul.f32 %v705_v10, %v702_v12 }
 0x475   : > { %v713_v14 = vadd.f32 %v711_v1, %v707_v13  ;;  %v714_v15 = vadd.f32 %v711_v1, %v708_v51 }
 0x477   : > { %v995_v16 = vadd.f32 %v714_v15, %v713_v14 }
 0x479   : > { %996 = vadd.xlane.f32.xlu1 %v995_v16 }
 0x4f7   : > { %v1001_v52 = vpop.xlane.xlu0 %1000 }
 0x4f8   : > { %v1002_v17 = vmul.f32 0.00390625, %v1001_v52 }
 0x4fa   : > { %v1014_v18 = vrot.slane %v1002_v17, 4 }
 0x4fc   : > { %v1015_v19 = vmax.f32 %v1002_v17, %v1014_v18 }
 0x4fe   : > { %v1016_v26 = vrot.slane %v1015_v19, 2 }
 0x500   : > { %v1017_v30 = vmax.f32 %v1015_v19, %v1016_v26 }
 0x502   : > { %v1018_v33 = vrot.slane %v1017_v30, 1 }
 0x504   : > { %v1019_v36 = vmax.f32 %v1017_v30, %v1018_v33 }
 0x506   : > { %v997_v22 = vpop.xlane.xlu1 %996 }
 0x507   : > { %v998_v23 = vmul.f32 0.00390625, %v997_v22 }
 0x509   : > { %v1003_v27 = vrot.slane %v998_v23, 4 }
 0x50b   : > { %v1004_v29 = vmax.f32 %v998_v23, %v1003_v27 }
 0x50d   : > { %v1005_v31 = vrot.slane %v1004_v29, 2 }
 0x50f   : > { %v1006_v32 = vmax.f32 %v1004_v29, %v1005_v31 }
 0x511   : > { %v1007_v34 = vrot.slane %v1006_v32, 1 }
 0x513   : > { %v1008_v35 = vmax.f32 %v1006_v32, %v1007_v34 }
 0x515   : > { %1395 = vpush %v1008_v35 }
 0x516   : > { %1397 = vpush %v1019_v36 }
 0x546   : > { %s1396_s17 = spop %1395 }
 0x547   : > { %v1010_v37 = vstv %s1396_s17  ;;  %s1398_s18 = spop %1397 }
 0x548   : > { %v1011_v38 = vsub.f32 %v998_v23, %v1010_v37  ;;  %v1021_v39 = vstv %s1398_s18 }
 0x549   : > { %v1022_v40 = vsub.f32 %v1002_v17, %v1021_v39 }
 0x54a   : > { %v1012_v41 = vmul.f32 1.442695, %v1011_v38 }
 0x54b   : > { %v1023_v42 = vmul.f32 1.442695, %v1022_v40 }
 0x54c   : > { %1433 = vpow2.f32 %v1012_v41 }
 0x54d   : > { %1435 = vpow2.f32 %v1023_v42 }
 0x556   : > { %v1434_v43 = vpop.eup %1433 }
 0x557   : > { %v1436_v44 = vpop.eup %1435 }
 0x558   : > { %v1026_v46 = vsel %vm795_vm5, %v1434_v43, %v1436_v44 }
 0x559   : > { %1335 = vmatpush3.msra.mxu1 %v1026_v46 }
 0x55a   : > { %1337 = vmatmul.mubr.msk.f32.vlgmr.msra.gmra.mrb[8].mxu1 %vm444_vm1, %v1025_v45 }
 0x62d   : > { %v1096_v47 = vpop.f32.mrb[8].mxu1 }
 0x62e   : > { %1437 = vrcp.f32 %v1096_v47  ;;  %v1338_v20 = vpop.f32.mrb[9].mxu1 }
 0x638   : > { %v1438_v21 = vpop.eup %1437 }
 0x639   : > { %v1102_v48 = vmul.f32 %v1438_v21, %v1436_v44  ;;  %v1101_v53 = vmul.f32 %v1438_v21, %v1434_v43 }
 0x63b   : > { %1112 = vperm.xlu0 %1426, %v1102_v48   ;;  %1105 = vperm.xlu1 %1425, %v1101_v53  }
 0x6ba   : > { %v1113_v54 = vpop.permute.xlu0 %1112  ;;  %v1106_v55 = vpop.permute.xlu1 %1105 }
 0x6bb   : > { %v1115_v56 = vmul.f32 %v1113_v54, %v713_v14  ;;  %v1116_v57 = vmul.f32 %v1113_v54, %v714_v15  ;;  %v1108_v58 = vmul.f32 %v1106_v55, %v991_v6  ;;  %v1109_v50 = vmul.f32 %v1106_v55, %v993_v7 }
 0x6bd   : > { %v1117_v59 = vadd.f32 %v1115_v56, %v1108_v58  ;;  %v1118_v60 = vadd.f32 %v1116_v57, %v1109_v50 }
 0x6bf   : > { %1119 = vmatprep.subr.mxu0 %v1118_v60 }
 0x6c0   : > { %1120 = vmatpush1.msra.mxu0 %v1117_v59 }
 0x6c1   : > { %1283 = vmatmul.mubr.msk.f32.vlgmr.msra.gmra.mrb[2].mxu0 %vm444_vm1, %v1025_v45 }
 0x794   : > { %v1185_v24 = vpop.f32.mrb[2].mxu0 }
 0x795   : > { %v1284_v61 = vmul.f32 -1.442695, %v1185_v24  ;;  %v1187_v62 = vpop.f32.mrb[3].mxu0 }
 0x796   : > { %v1285_v28 = vmul.f32 -1.442695, %v1187_v62 }
 0x797   : > { %1439 = vpow2.f32 %v1284_v61 }
 0x798   : > { %1441 = vpow2.f32 %v1285_v28 }
 0x7a1   : > { %v1440_v63 = vpop.eup %1439 }
 0x7a2   : > { %v1442_v0 = vpop.eup %1441  ;;  %v1196_v1 = vadd.f32 1.0, %v1440_v63 }
 0x7a3   : > { %v1197_v2 = vadd.f32 1.0, %v1442_v0 }
 0x7a4   : > { %1443 = vrcp.f32 %v1196_v1 }
 0x7a5   : > { %1445 = vrcp.f32 %v1197_v2 }
 0x7ae   : > { %v1444_v3 = vpop.eup %1443 }
 0x7af   : > { %v1446_v4 = vpop.eup %1445  ;;  %v1202_v5 = vmul.f32 %v1444_v3, %v1638_v49 }
 0x7b0   : > { %v1203_v6 = vmul.f32 %v1446_v4, %v1592_v25 }
 0x7b1   : > { %1204 = vst [vmem:[%s332_s24] sm:$0xff] %v1202_v5 }
 0x7b2   : > { %1205 = vst [vmem:[%s332_s24 + $0x8] sm:$0xff] %v1203_v6 }
 0x7b3 PF: > { %s19_s30 = sadd.s32 1, %s1453_s30  }
 0x7b4   : > { %p16_p4 = scmp.ge.s32.totalorder %s19_s30, 4  }
 0x7b6   :  { %18 = sbr.rel (!%p16_p4) target bundleno = 1 (0x1), region = 93 }

</bundles_post_ra>
